<compile_context>
chip_gen: v7x
topology: tpu7x:2x2x1
jax: 0.10.0
libtpu: 0.0.40
codegen_flags: <defaults>
</compile_context>

<pallas_src>
import jax
import jax.numpy as jnp
from jax.experimental import pallas as pl
from jax.experimental.pallas import tpu as pltpu


def _round_up(n, m):
    return ((n + m - 1) // m) * m


def _mlp_kernel(x_ref, w1_ref, b1_ref, w2_ref, b2_ref, w3_ref, b3_ref, o_ref):
    # x_ref: (TB, D) batch tile. Weight refs are full blocks (VMEM-resident).
    x = x_ref[...]

    h1 = jnp.dot(x, w1_ref[...], preferred_element_type=jnp.float32) + b1_ref[...]
    h1 = jnp.maximum(h1, 0.0)                                    # ReLU

    h2 = jnp.dot(h1, w2_ref[...], preferred_element_type=jnp.float32) + b2_ref[...]
    h2 = jnp.maximum(h2, 0.0)                                    # ReLU

    # Last layer computed transposed: (1, 32) . (TB, 32)^T -> (1, TB).
    # Keeps the per-tile output lane-dense (unmasked stores).
    z = jax.lax.dot_general(
        w3_ref[...], h2,
        dimension_numbers=(((1,), (1,)), ((), ())),
        preferred_element_type=jnp.float32)
    z = z + b3_ref[...]                                          # (1, 1) broadcast
    o_ref[...] = jax.nn.sigmoid(z)                               # (1, TB)


def predictor_forward(x, params, *, block_batch=1024):
    """x: (B, D) float32. params: dict w1,b1,w2,b2,w3,b3 (w's stored as (in, out))."""
    B, D = x.shape
    w1, b1 = params["w1"], params["b1"]           # (D, 64), (1, 64)
    w2, b2 = params["w2"], params["b2"]           # (64, 32), (1, 32)
    w3, b3 = params["w3"], params["b3"]           # (32, 1),  (1, 1)
    w3_row = w3.T                                 # (1, 32) lane-dense row

    # Batch tile size. Single tile: round B up to the f32 sublane (8).
    # Multi-tile: force a multiple of 128 so output stores are full-lane.
    tb = min(int(block_batch), _round_up(B, 8))
    if _round_up(B, 8) > tb:
        tb = _round_up(tb, 128)
    else:
        tb = _round_up(tb, 8)

    b_pad = _round_up(B, tb)
    if b_pad != B:
        x = jnp.pad(x, ((0, b_pad - B), (0, 0)))
    num_tiles = b_pad // tb

    const2 = lambda i: (0, 0)                     # weights: same block every step

    out = pl.pallas_call(
        _mlp_kernel,
        out_shape=jax.ShapeDtypeStruct((1, b_pad), jnp.float32),
        grid=(num_tiles,),
        in_specs=[
            pl.BlockSpec((tb, D), lambda i: (i, 0)),          # streamed x tiles
            pl.BlockSpec(w1.shape, const2),
            pl.BlockSpec(b1.shape, const2),
            pl.BlockSpec(w2.shape, const2),
            pl.BlockSpec(b2.shape, const2),
            pl.BlockSpec(w3_row.shape, const2),
            pl.BlockSpec(b3.shape, const2),
        ],
        out_specs=pl.BlockSpec((1, tb), lambda i: (0, i)),    # lane-dense slab
        compiler_params=pltpu.CompilerParams(
            dimension_semantics=("parallel",),
            vmem_limit_bytes=32 << 20,
        ),
    )(x, w1, b1, w2, b2, w3_row, b3)

    # (1, b_pad) -> (B, 1), dropping the batch padding.
    return out[0, :B].reshape(B, 1)


def init_params(key, input_dim):
    """Deterministic init mimicking PyTorch nn.Linear default U[-1/sqrt(fan_in), +1/sqrt(fan_in)]."""
    dims = [(input_dim, 64), (64, 32), (32, 1)]
    params = {}
    for i, (fan_in, fan_out) in enumerate(dims, start=1):
        key, kw, kb = jax.random.split(key, 3)
        bound = 1.0 / jnp.sqrt(float(fan_in))
        params[f"w{i}"] = jax.random.uniform(
            kw, (fan_in, fan_out), jnp.float32, minval=-bound, maxval=bound)
        params[f"b{i}"] = jax.random.uniform(
            kb, (1, fan_out), jnp.float32, minval=-bound, maxval=bound)
    return params


def _reference_forward(x, params):
    h1 = jnp.maximum(x @ params["w1"] + params["b1"], 0.0)
    h2 = jnp.maximum(h1 @ params["w2"] + params["b2"], 0.0)
    return jax.nn.sigmoid(h2 @ params["w3"] + params["b3"])


if __name__ == "__main__":
    key = jax.random.PRNGKey(0)
    k_x, k_x2, k_x3, k_p = jax.random.split(key, 4)

    batch, input_dim = 8, 16
    params = init_params(k_p, input_dim)

    # Small sanity case (single tile, sublane-padded batch).
    x = jax.random.normal(k_x, (batch, input_dim), dtype=jnp.float32)
    out = jax.block_until_ready(predictor_forward(x, params))
    ref = _reference_forward(x, params)
    assert out.shape == (batch, 1)
    assert jnp.allclose(out, ref, atol=1e-5, rtol=1e-5)

    # Multi-tile case with batch padding (3 tiles of 128, last one padded).
    batch2 = 300
    x2 = jax.random.normal(k_x2, (batch2, input_dim), dtype=jnp.float32)
    out2 = jax.block_until_ready(predictor_forward(x2, params, block_batch=128))
    ref2 = _reference_forward(x2, params)
    assert out2.shape == (batch2, 1)
    assert jnp.allclose(out2, ref2, atol=1e-5, rtol=1e-5)

    # Multi-tile case where the requested block is rounded up to a lane multiple.
    batch3 = 300
    x3 = jax.random.normal(k_x3, (batch3, input_dim), dtype=jnp.float32)
    out3 = jax.block_until_ready(predictor_forward(x3, params, block_batch=64))
    ref3 = _reference_forward(x3, params)
    assert out3.shape == (batch3, 1)
    assert jnp.allclose(out3, ref3, atol=1e-5, rtol=1e-5)

    print("KERNEL_OK")
</pallas_src>

<mosaic_0001>
module attributes {stable_mosaic.version = 11 : i64} {
  func.func @_mlp_kernel(%arg0: i32, %arg1: memref<8x16xf32, #tpu.memory_space<vmem>>, %arg2: memref<16x64xf32, #tpu.memory_space<vmem>>, %arg3: memref<1x64xf32, #tpu.memory_space<vmem>>, %arg4: memref<64x32xf32, #tpu.memory_space<vmem>>, %arg5: memref<1x32xf32, #tpu.memory_space<vmem>>, %arg6: memref<1x32xf32, #tpu.memory_space<vmem>>, %arg7: memref<1x1xf32, #tpu.memory_space<vmem>>, %arg8: memref<1x8xf32, #tpu.memory_space<vmem>>) attributes {dimension_semantics = [#tpu.dimension_semantics<parallel>], iteration_bounds = array<i64: 1>, scalar_prefetch = 0 : i64, scratch_operands = 0 : i64, tpu.core_type = #tpu.core_type<tc>, window_params = [{transform_indices = @transform_0, window_bounds = array<i64: 8, 16>}, {pipeline_mode = #tpu.pipeline_mode<synchronous>, transform_indices = @transform_1, window_bounds = array<i64: 16, 64>}, {pipeline_mode = #tpu.pipeline_mode<synchronous>, transform_indices = @transform_2, window_bounds = array<i64: 1, 64>}, {pipeline_mode = #tpu.pipeline_mode<synchronous>, transform_indices = @transform_3, window_bounds = array<i64: 64, 32>}, {pipeline_mode = #tpu.pipeline_mode<synchronous>, transform_indices = @transform_4, window_bounds = array<i64: 1, 32>}, {pipeline_mode = #tpu.pipeline_mode<synchronous>, transform_indices = @transform_5, window_bounds = array<i64: 1, 32>}, {pipeline_mode = #tpu.pipeline_mode<synchronous>, transform_indices = @transform_6, window_bounds = array<i64: 1, 1>}, {transform_indices = @transform_7, window_bounds = array<i64: 1, 8>}]} {
    %c0 = arith.constant 0 : index
    %c0_0 = arith.constant 0 : index
    %0 = vector.load %arg1[%c0, %c0_0] : memref<8x16xf32, #tpu.memory_space<vmem>>, vector<8x16xf32>
    %c0_1 = arith.constant 0 : index
    %c0_2 = arith.constant 0 : index
    %1 = vector.load %arg2[%c0_1, %c0_2] : memref<16x64xf32, #tpu.memory_space<vmem>>, vector<16x64xf32>
    %cst = arith.constant dense<0.000000e+00> : vector<8x64xf32>
    %2 = tpu.matmul %0, %1, %cst {dimension_numbers = #tpu.dot_dimension_numbers<[1], [0], [0], [1], [0, 0, 1, 1], [], []>} : vector<8x16xf32>, vector<16x64xf32>, vector<8x64xf32> -> vector<8x64xf32>
    %c0_3 = arith.constant 0 : index
    %c0_4 = arith.constant 0 : index
    %3 = vector.load %arg3[%c0_3, %c0_4] : memref<1x64xf32, #tpu.memory_space<vmem>>, vector<1x64xf32>
    %4 = vector.broadcast %3 : vector<1x64xf32> to vector<8x64xf32>
    %5 = arith.addf %2, %4 : vector<8x64xf32>
    %cst_5 = arith.constant 0.000000e+00 : f32
    %6 = vector.broadcast %cst_5 : f32 to vector<8x64xf32>
    %7 = arith.maximumf %5, %6 : vector<8x64xf32>
    %c0_6 = arith.constant 0 : index
    %c0_7 = arith.constant 0 : index
    %8 = vector.load %arg4[%c0_6, %c0_7] : memref<64x32xf32, #tpu.memory_space<vmem>>, vector<64x32xf32>
    %cst_8 = arith.constant dense<0.000000e+00> : vector<8x32xf32>
    %9 = tpu.matmul %7, %8, %cst_8 {dimension_numbers = #tpu.dot_dimension_numbers<[1], [0], [0], [1], [0, 0, 1, 1], [], []>} : vector<8x64xf32>, vector<64x32xf32>, vector<8x32xf32> -> vector<8x32xf32>
    %c0_9 = arith.constant 0 : index
    %c0_10 = arith.constant 0 : index
    %10 = vector.load %arg5[%c0_9, %c0_10] : memref<1x32xf32, #tpu.memory_space<vmem>>, vector<1x32xf32>
    %11 = vector.broadcast %10 : vector<1x32xf32> to vector<8x32xf32>
    %12 = arith.addf %9, %11 : vector<8x32xf32>
    %cst_11 = arith.constant 0.000000e+00 : f32
    %13 = vector.broadcast %cst_11 : f32 to vector<8x32xf32>
    %14 = arith.maximumf %12, %13 : vector<8x32xf32>
    %c0_12 = arith.constant 0 : index
    %c0_13 = arith.constant 0 : index
    %15 = vector.load %arg6[%c0_12, %c0_13] : memref<1x32xf32, #tpu.memory_space<vmem>>, vector<1x32xf32>
    %cst_14 = arith.constant dense<0.000000e+00> : vector<1x8xf32>
    %16 = tpu.matmul %15, %14, %cst_14 {dimension_numbers = #tpu.dot_dimension_numbers<[1], [1], [0], [0], [0, 0, 1, 0], [], []>} : vector<1x32xf32>, vector<8x32xf32>, vector<1x8xf32> -> vector<1x8xf32>
    %c0_15 = arith.constant 0 : index
    %c0_16 = arith.constant 0 : index
    %17 = vector.load %arg7[%c0_15, %c0_16] : memref<1x1xf32, #tpu.memory_space<vmem>>, vector<1x1xf32>
    %18 = vector.broadcast %17 : vector<1x1xf32> to vector<1x8xf32>
    %19 = arith.addf %16, %18 : vector<1x8xf32>
    %20 = arith.negf %19 : vector<1x8xf32>
    %21 = math.exp %20 : vector<1x8xf32>
    %cst_17 = arith.constant 1.000000e+00 : f32
    %22 = vector.broadcast %cst_17 : f32 to vector<1x8xf32>
    %23 = arith.addf %22, %21 : vector<1x8xf32>
    %24 = arith.divf %22, %23 : vector<1x8xf32>
    %c0_18 = arith.constant 0 : index
    %c0_19 = arith.constant 0 : index
    %25 = vector.load %arg8[%c0_18, %c0_19] : memref<1x8xf32, #tpu.memory_space<vmem>>, vector<1x8xf32>
    tpu.vector_store %arg8[%c0_18, %c0_19], %24 {strides = array<i32>} : memref<1x8xf32, #tpu.memory_space<vmem>>, vector<1x8xf32>,
    return
  }
  func.func @transform_0(%arg0: i32) -> (i32, i32) {
    %c0_i32 = arith.constant 0 : i32
    %c0_i32_0 = arith.constant 0 : i32
    return %arg0, %c0_i32 : i32, i32
  }
  func.func @transform_1(%arg0: i32) -> (i32, i32) {
    %c0_i32 = arith.constant 0 : i32
    %c0_i32_0 = arith.constant 0 : i32
    %c0_i32_1 = arith.constant 0 : i32
    return %c0_i32, %c0_i32_0 : i32, i32
  }
  func.func @transform_2(%arg0: i32) -> (i32, i32) {
    %c0_i32 = arith.constant 0 : i32
    %c0_i32_0 = arith.constant 0 : i32
    %c0_i32_1 = arith.constant 0 : i32
    return %c0_i32, %c0_i32_0 : i32, i32
  }
  func.func @transform_3(%arg0: i32) -> (i32, i32) {
    %c0_i32 = arith.constant 0 : i32
    %c0_i32_0 = arith.constant 0 : i32
    %c0_i32_1 = arith.constant 0 : i32
    return %c0_i32, %c0_i32_0 : i32, i32
  }
  func.func @transform_4(%arg0: i32) -> (i32, i32) {
    %c0_i32 = arith.constant 0 : i32
    %c0_i32_0 = arith.constant 0 : i32
    %c0_i32_1 = arith.constant 0 : i32
    return %c0_i32, %c0_i32_0 : i32, i32
  }
  func.func @transform_5(%arg0: i32) -> (i32, i32) {
    %c0_i32 = arith.constant 0 : i32
    %c0_i32_0 = arith.constant 0 : i32
    %c0_i32_1 = arith.constant 0 : i32
    return %c0_i32, %c0_i32_0 : i32, i32
  }
  func.func @transform_6(%arg0: i32) -> (i32, i32) {
    %c0_i32 = arith.constant 0 : i32
    %c0_i32_0 = arith.constant 0 : i32
    %c0_i32_1 = arith.constant 0 : i32
    return %c0_i32, %c0_i32_0 : i32, i32
  }
  func.func @transform_7(%arg0: i32) -> (i32, i32) {
    %c0_i32 = arith.constant 0 : i32
    %c0_i32_0 = arith.constant 0 : i32
    return %c0_i32, %arg0 : i32, i32
  }
}

</mosaic_0001>

<bundles_post_ra>
// kernel: tpu_custom_call.1
= control target key start
LH: loop header
LB: loop body
LE: loop exit
PB: predicated region body
PF: predicated region fallthrough
CT: control target
= control target key end

     0   :  { %s520_s0 = inlined_call_operand.vmem [shape: f32[8,16], index: 0, kind: input, shape index: {}]   ;;  %s521_s1 = inlined_call_operand.vmem [shape: f32[16,64], index: 1, kind: input, shape index: {}]   ;;  %s522_s2 = inlined_call_operand.vmem [shape: f32[1,64], index: 2, kind: input, shape index: {}]   ;;  %s523_s3 = inlined_call_operand.vmem [shape: f32[64,32], index: 3, kind: input, shape index: {}]   ;;  %s524_s4 = inlined_call_operand.vmem [shape: f32[1,32], index: 4, kind: input, shape index: {}]   ;;  %s525_s5 = inlined_call_operand.vmem [shape: f32[1,32], index: 5, kind: input, shape index: {}]   ;;  %s526_s6 = inlined_call_operand.<no memory space> [shape: f32[1,1], index: 6, kind: input, shape index: {}]   ;;  %s527_s7 = inlined_call_operand.hbm [shape: f32[1,8], index: 7, kind: output, shape index: {}]  }
   0x1   :  { %v12_v0 = vstv %s526_s6 }
   0x2   :  { %13 = vst [vmem:[#allocation2] sm:$0x1] %v12_v0 }
   0x3   :  { %v30_v1 = vld [vmem:[%s521_s1] sm:$0xff]  ;;  %v31_v2 = vld [vmem:[%s521_s1 + $0x8] sm:$0xff]  ;;  %v415_v3 = vmov 0.0|0.0   ;;  %vm416_vm0 = vmmov 0   ;;  %v417_v5 = vmov 0.0   ;;  %v116_v8 = vld [vmem:[%s523_s3 + $0x10] sm:$0xff] }
   0x4   :  { %366 = vmatprep.subr.bf16.mxu0 %v415_v3  ;;  %v367_v4 = vpack.c.bf16 %v31_v2, %v30_v1  ;;  %339 = vmatprep.mubr.msk.f32.mxu0 %vm416_vm0, %v417_v5  ;;  %v114_v6 = vld [vmem:[%s523_s3] sm:$0xff]  ;;  %v115_v7 = vld [vmem:[%s523_s3 + $0x8] sm:$0xff]  ;;  %v117_v10 = vld [vmem:[%s523_s3 + $0x18] sm:$0xff]  ;;  %vm39_vm1 = vcmask 130048  }
   0x5   :  { %369 = vmatprep.subr.bf16.mxu1 %v415_v3  ;;  %v370_v9 = vpack.c.bf16 %v115_v7, %v114_v6  ;;  %358 = vmatprep.mubr.msk.f32.mxu1 %vm416_vm0, %v417_v5  ;;  %v29_v11 = vld [vmem:[%s520_s0] sm:$0xff] }
   0x6   :  { %368 = vmatpush3.bf16.msra.mxu0 %v367_v4 }
   0x7   :  { %14 = vsyncpa [#allocation4], 0  ;;  %371 = vmatpush3.bf16.msra.mxu1 %v370_v9  ;;  %v373_v12 = vpack.c.bf16 %v117_v10, %v116_v8  ;;  %361 = vmatprep.subr.mxu0 %v417_v5  ;;  %v118_v13 = vld [vmem:[%s523_s3 + $0x20] sm:$0xff]  ;;  %v119_v14 = vld [vmem:[%s523_s3 + $0x28] sm:$0xff]  ;;  %vm129_vm2 = vcmask 523264   ;;  %v418_v25 = vmov 0   ;;  %v211_v32 = vlaneseq }
   0x8   :  { %372 = vmatprep.subr.bf16.mxu1 %v415_v3  ;;  %v376_v15 = vpack.c.bf16 %v119_v14, %v118_v13  ;;  %v120_v16 = vld [vmem:[%s523_s3 + $0x30] sm:$0xff]  ;;  %v121_v17 = vld [vmem:[%s523_s3 + $0x38] sm:$0xff]  ;;  %v314_v19 = vld [vmem:[%s522_s2] ss:$0 sm:$0xff]  ;;  %386 = vset.pattern.permute.xlu0 %v418_v25  ;;  %vm215_vm3 = vcmask 261120   ;;  %vm298_vm4 = vcmask 57344  }
   0x9   :  { %340 = vmatmul.mubr.msk.f32.vlgmr.msra.gmra.mrb[0].mxu0 %vm39_vm1, %v29_v11  ;;  %v379_v18 = vpack.c.bf16 %v121_v17, %v120_v16  ;;  %v205_v24 = vld [vmem:[#allocation2] sm:$0x1]  ;;  %v212_v33 = vshrl.u32 %v211_v32, 7 }
   0xa   :  { %363 = vmatprep.mubr.msk.f32.mxu0 %vm416_vm0, %v417_v5  ;;  %208 = vperm.xlu0 %386, %v205_v24   ;;  %v316_v26 = vld [vmem:[%s524_s4] ss:$0 sm:$0xff]  ;;  %s419_s4 = smov [#allocation3]  }
   0xb   :  { %374 = vmatpush3.bf16.msra.mxu1 %v373_v12  ;;  %v204_v31 = vld [vmem:[%s525_s5] sm:$0x1]  ;;  %v213_v34 = vsub.s32 0, %v212_v33  ;;  %s306_s26 = sshll.u32 %s419_s4, 4  ;;  %s307_s26 = int_to_ptr.vmem [resolvable:$true] %s306_s26 }
   0xc   :  { %375 = vmatprep.subr.bf16.mxu1 %v415_v3  ;;  %s391_s5 = scalar_lea.vmem %s307_s26, 16  ;;  %s395_s27 = scalar_lea.vmem %s307_s26, 32 }
   0xd   :  { %p392_p0 = scmp.ne.s32.totalorder %s307_s26, %s391_s5  ;;  %p396_p1 = scmp.lt.s32.totalorder %s307_s26, %s307_s26 }
   0xe   :  { %p397_p2 = scmp.lt.s32.totalorder %s395_s27, %s391_s5 }
   0xf   :  { %377 = vmatpush3.bf16.msra.mxu1 %v376_v15 }
  0x10   :  { %378 = vmatprep.subr.bf16.mxu1 %v415_v3  ;;  %p398_p3 = por %p397_p2, %p396_p1 }
  0x12   :  { %p399_p4 = pnand %p398_p3, %p392_p0 }
  0x13   :  { %380 = vmatpush3.bf16.msra.mxu1 %v379_v18 }
  0x89   :  { %v209_v35 = vpop.permute.xlu0 %208 }
  0x8a   :  { %v214_v36 = vrot.slane %v209_v35, %v213_v34 }
  0xdc   :  { %v109_v20 = vpop.f32.mrb[0].mxu0 }
  0xdd   :  { %v110_v21 = vadd.f32 %v314_v19, %v109_v20  ;;  %v341_v22 = vpop.f32.mrb[1].mxu0 }
  0xdf   :  { %v113_v23 = vmax.f32 %v110_v21, 0.0 }
  0xe1   :  { %359 = vmatmul.mubr.msk.f32.vlgmr.msra.gmra.mrb[0].mxu1 %vm129_vm2, %v113_v23 }
 0x1b4   :  { %v199_v27 = vpop.f32.mrb[0].mxu1 }
 0x1b5   :  { %v200_v28 = vadd.f32 %v316_v26, %v199_v27  ;;  %v360_v29 = vpop.f32.mrb[1].mxu1 }
 0x1b7   :  { %v203_v30 = vmax.f32 %v200_v28, 0.0 }
 0x1b9   :  { %362 = vmatpush3.xpose.msk.msra.mxu0 %vm215_vm3, %v203_v30 }
 0x1bc   :  { %364 = vmatmul.mubr.msk.f32.vlgmr.msra.gmra.mrb[2].mxu0 %vm215_vm3, %v204_v31 }
 0x28f   :  { %v288_v37 = vpop.f32.mrb[2].mxu0 }
 0x290   :  { %v289_v38 = vadd.f32 %v288_v37, %v214_v36  ;;  %v365_v39 = vpop.f32.mrb[3].mxu0 }
 0x292   :  { %v320_v40 = vmul.f32 -1.442695, %v289_v38 }
 0x294   :  { %387 = vpow2.f32 %v320_v40 }
 0x29e   :  { %v388_v41 = vpop.eup %387 }
 0x29f   :  { %v295_v42 = vadd.f32 1.0, %v388_v41 }
 0x2a1   :  { %389 = vrcp.f32 %v295_v42 }
 0x2ab   :  { %v390_v43 = vpop.eup %389 }
 0x2ac   :  { %299 = vst.msk [vmem:[#allocation3] sm:$0x1] %vm298_vm4, %v390_v43 }
 0x2ad   :  { %402 = shalt.err (!%p399_p4)
}
 0x2ae   :  { %s403_s30 = scalar_lea.hbm %s527_s7, 16 }
 0x2af   :  { %p404_p5 = scmp.ne.s32.totalorder %s527_s7, %s403_s30  ;;  %p407_p6 = scmp.lt.u32.totalorder %s403_s30, %s527_s7 }
 0x2b1   :  { %p409_p7 = pnand %p407_p6, %p404_p5 }
 0x2b3   :  { %412 = shalt.err (!%p409_p7)
}
 0x2b4   :  { %309 = dma.vmem_to_hbm [thread:$0]  %s307_s26, 16, %s527_s7, [#allocation4]  }
 0x2b5   :  { %413 = dma.done.wait [#allocation4], 16  }
 0x2b6   :  { %414 = vsyncadd [#allocation4], 4294967280 }
 0x2b7   :  { %313 = vsyncpa [#allocation4], 1 }

</bundles_post_ra>
